<compile_context>
chip_gen: v7x
topology: tpu7x:2x2x1
jax: 0.10.0
libtpu: 0.0.40
codegen_flags: <defaults>
</compile_context>

<pallas_src>
import functools

import jax
import jax.numpy as jnp
from jax.experimental import pallas as pl
from jax.experimental.pallas import tpu as pltpu


def _round_up(x, m):
    return ((x + m - 1) // m) * m


def _make_block_kernel(C, H, W, use_act, add_residual):
    """conv3x3 (one K=9*Cin matmul) + bias + IN (+ReLU) (+residual)."""
    Wp = W + 2
    HWp = H * Wp                       # valid compute-grid length
    HWp_L = _round_up(HWp, 128)        # lane-dense width actually computed/stored
    inv_n = 1.0 / float(H * W)         # IN divides by the number of VALID pixels

    def kernel(*refs):
        if add_residual:
            mask_ref, xin_ref, w_ref, b_ref, res_ref, out_ref = refs
        else:
            mask_ref, xin_ref, w_ref, b_ref, out_ref = refs
            res_ref = None

        # --- In-register im2col: 9 lane-shifted views of the flattened padded
        # activation, stacked along Cin -> (9*Cin, HWp_L).  For tap (ky,kx) the
        # needed RHS is the contiguous slice starting at ky*Wp+kx.
        taps = [xin_ref[0, :, pl.ds(ky * Wp + kx, HWp_L)]
                for ky in range(3) for kx in range(3)]
        rhs = jnp.concatenate(taps, axis=0)                 # (9*Cin, HWp_L)

        # --- One MXU matmul with K = 9*Cin, f32 accumulate.  No VMEM RMW.
        acc = jnp.dot(w_ref[...], rhs,
                      preferred_element_type=jnp.float32)   # (tc, HWp_L) f32
        acc = acc + b_ref[...]                              # bias (tc, 1)

        # --- InstanceNorm2d over the VALID pixels only (one-pass masked stats,
        # biased variance, eps=1e-5).  Garbage columns/tail are zeroed by mask.
        mask = mask_ref[...]                                # (1, HWp_L) f32 {0,1}
        acc_m = acc * mask
        s1 = jnp.sum(acc_m, axis=1, keepdims=True)
        s2 = jnp.sum(acc_m * acc_m, axis=1, keepdims=True)
        mean = s1 * inv_n
        var = jnp.maximum(s2 * inv_n - mean * mean, 0.0)
        y = (acc - mean) * jax.lax.rsqrt(var + 1e-5)

        if use_act:
            y = jnp.maximum(y, 0.0)
        if add_residual:
            # Residual is pre-laid-out in the same (garbage-column) layout, f32.
            y = y + res_ref[0].astype(jnp.float32)

        out_ref[0] = y.astype(out_ref.dtype)                # lane-dense full store

    return kernel


def _block_call(xin_flat, mask, w_flat, b2d, res_flat, *,
                C, H, W, use_act, out_dtype, tc):
    """One cnnBlock. xin_flat: (N, C, Lpad) reflect-padded + flattened activation."""
    N = xin_flat.shape[0]
    Lpad = xin_flat.shape[-1]
    Wp = W + 2
    HWp = H * Wp
    HWp_L = _round_up(HWp, 128)
    n_ct = C // tc

    in_specs = [
        pl.BlockSpec((1, HWp_L), lambda n, c: (0, 0)),         # valid-pixel mask
        pl.BlockSpec((1, C, Lpad), lambda n, c: (n, 0, 0)),    # padded activation
        pl.BlockSpec((tc, 9 * C), lambda n, c: (c, 0)),        # weights (Cout, 9*Cin)
        pl.BlockSpec((tc, 1), lambda n, c: (c, 0)),            # bias
    ]
    args = [mask, xin_flat, w_flat, b2d]
    if res_flat is not None:
        in_specs.append(pl.BlockSpec((1, tc, HWp_L), lambda n, c: (n, c, 0)))
        args.append(res_flat)

    return pl.pallas_call(
        _make_block_kernel(C, H, W, use_act, res_flat is not None),
        out_shape=jax.ShapeDtypeStruct((N, C, HWp_L), out_dtype),
        grid=(N, n_ct),
        in_specs=in_specs,
        out_specs=pl.BlockSpec((1, tc, HWp_L), lambda n, c: (n, c, 0)),
        compiler_params=pltpu.CompilerParams(
            dimension_semantics=("parallel", "parallel"),
            vmem_limit_bytes=48 * 1024 * 1024,
        ),
    )(*args)


@functools.partial(jax.jit, static_argnames=("matmul_dtype",))
def residual_block(x, w1, b1, w2, b2, matmul_dtype=jnp.bfloat16):
    """x: (N, C, H, W); w*: (C, C, 3, 3) OIHW; b*: (C,). Returns (N, C, H, W) f32."""
    N, C, H, W = x.shape
    assert H >= 2 and W >= 2, "reflect padding requires H >= 2 and W >= 2"
    Hp, Wp = H + 2, W + 2
    HWp = H * Wp
    HWp_L = _round_up(HWp, 128)                     # lane-dense output width
    # Padded-flat input length: the (ky=2,kx=2) tap slice of width HWp_L must
    # stay in bounds, rounded to a lane multiple.
    Lpad = _round_up(HWp_L + 2 * Wp + 2, 128)

    # Channel tile -> second parallel grid axis (feeds both TCs on v7x).
    tc = C if C <= 128 else 128
    assert C % tc == 0, "C must be a multiple of 128 when C > 128"

    # Mask of valid pixels in the lane-dense (H*Wp rounded to 128) layout.
    idx = jnp.arange(HWp_L, dtype=jnp.int32)
    mask = (jnp.logical_and(idx < HWp, (idx % Wp) < W)
            .astype(jnp.float32).reshape(1, HWp_L))

    # Weights repacked once: (Cout, Cin, 3, 3) -> (Cout, (ky*3+kx)*Cin + ci).
    def repack(w):
        return jnp.transpose(w, (0, 2, 3, 1)).reshape(C, 9 * C).astype(matmul_dtype)

    w1_f, w2_f = repack(w1), repack(w2)
    b1_2 = b1.reshape(C, 1).astype(jnp.float32)
    b2_2 = b2.reshape(C, 1).astype(jnp.float32)

    def pad_flat(a):
        """(N, C, H, W) -> (N, C, Lpad): reflect pad, flatten, cast, zero tail."""
        ap = jnp.pad(a, ((0, 0), (0, 0), (1, 1), (1, 1)), mode="reflect")
        af = ap.reshape(N, C, Hp * Wp).astype(matmul_dtype)
        return jnp.pad(af, ((0, 0), (0, 0), (0, Lpad - Hp * Wp)))

    xpad_flat = pad_flat(x)

    # Residual x in the kernel's output layout (zero garbage cols, f32) so the
    # in-kernel add is a plain full-ref add and keeps f32 precision.
    xres = jnp.pad(x.astype(jnp.float32), ((0, 0), (0, 0), (0, 0), (0, 2)))
    xres = xres.reshape(N, C, HWp)
    xres = jnp.pad(xres, ((0, 0), (0, 0), (0, HWp_L - HWp)))

    # Block 1: conv -> IN -> ReLU.  Intermediate kept in matmul_dtype (bf16 in
    # the production path) to halve the HBM round-trip between the two blocks.
    y_flat = _block_call(xpad_flat, mask, w1_f, b1_2, None,
                         C=C, H=H, W=W, use_act=True,
                         out_dtype=matmul_dtype, tc=tc)
    y = y_flat[:, :, :HWp].reshape(N, C, H, Wp)[:, :, :, :W]

    # Block 2: conv -> IN -> + residual x (f32).
    ypad_flat = pad_flat(y)
    out_flat = _block_call(ypad_flat, mask, w2_f, b2_2, xres,
                           C=C, H=H, W=W, use_act=False,
                           out_dtype=jnp.float32, tc=tc)
    out = out_flat[:, :, :HWp].reshape(N, C, H, Wp)[:, :, :, :W]
    return out


def _reference(x, w1, b1, w2, b2):
    """Pure-JAX f32 reference for correctness checking."""

    def block(x, w, b, act):
        xp = jnp.pad(x, ((0, 0), (0, 0), (1, 1), (1, 1)), mode="reflect")
        y = jax.lax.conv_general_dilated(
            xp, w, window_strides=(1, 1), padding="VALID",
            dimension_numbers=("NCHW", "OIHW", "NCHW"))
        y = y + b[None, :, None, None]
        mean = jnp.mean(y, axis=(2, 3), keepdims=True)
        var = jnp.mean(jnp.square(y - mean), axis=(2, 3), keepdims=True)
        y = (y - mean) * jax.lax.rsqrt(var + 1e-5)
        return jnp.maximum(y, 0.0) if act else y

    return x + block(block(x, w1, b1, True), w2, b2, False)


if __name__ == "__main__":
    N, C, H, W = 2, 4, 16, 16

    key = jax.random.PRNGKey(0)
    kx, kw1, kb1, kw2, kb2 = jax.random.split(key, 5)

    x = jax.random.normal(kx, (N, C, H, W), dtype=jnp.float32)
    w1 = 0.1 * jax.random.normal(kw1, (C, C, 3, 3), dtype=jnp.float32)
    b1 = 0.1 * jax.random.normal(kb1, (C,), dtype=jnp.float32)
    w2 = 0.1 * jax.random.normal(kw2, (C, C, 3, 3), dtype=jnp.float32)
    b2 = 0.1 * jax.random.normal(kb2, (C,), dtype=jnp.float32)

    ref = _reference(x, w1, b1, w2, b2)

    # Exact-precision path (f32 MXU operands): tight tolerance vs. f32 reference.
    out = jax.block_until_ready(
        residual_block(x, w1, b1, w2, b2, matmul_dtype=jnp.float32))
    assert out.shape == (N, C, H, W)
    assert jnp.allclose(out, ref, atol=5e-4, rtol=5e-4), "f32 mismatch vs reference"

    # Production path (bf16 MXU operands/activations, f32 accumulate + norm + residual).
    out_bf16 = jax.block_until_ready(
        residual_block(x, w1, b1, w2, b2, matmul_dtype=jnp.bfloat16))
    assert jnp.allclose(out_bf16, ref, atol=5e-2, rtol=5e-2), "bf16 mismatch vs reference"

    print("KERNEL_OK")
</pallas_src>

<mosaic_0001>
module attributes {stable_mosaic.version = 11 : i64} {
  func.func @kernel(%arg0: i32, %arg1: i32, %arg2: memref<1x384xf32, #tpu.memory_space<vmem>>, %arg3: memref<1x4x512xf32, #tpu.memory_space<vmem>>, %arg4: memref<4x36xf32, #tpu.memory_space<vmem>>, %arg5: memref<4x1xf32, #tpu.memory_space<vmem>>, %arg6: memref<1x4x384xf32, #tpu.memory_space<vmem>>) attributes {dimension_semantics = [#tpu.dimension_semantics<parallel>, #tpu.dimension_semantics<parallel>], iteration_bounds = array<i64: 2, 1>, scalar_prefetch = 0 : i64, scratch_operands = 0 : i64, tpu.core_type = #tpu.core_type<tc>, window_params = [{pipeline_mode = #tpu.pipeline_mode<synchronous>, transform_indices = @transform_0, window_bounds = array<i64: 1, 384>}, {transform_indices = @transform_1, window_bounds = array<i64: 1, 4, 512>}, {transform_indices = @transform_2, window_bounds = array<i64: 4, 36>}, {transform_indices = @transform_3, window_bounds = array<i64: 4, 1>}, {transform_indices = @transform_4, window_bounds = array<i64: 1, 4, 384>}]} {
    %c0 = arith.constant 0 : index
    %c0_0 = arith.constant 0 : index
    %c0_1 = arith.constant 0 : index
    %0 = vector.load %arg3[%c0, %c0_0, %c0_1] : memref<1x4x512xf32, #tpu.memory_space<vmem>>, vector<1x4x384xf32>
    %1 = vector.shape_cast %0 : vector<1x4x384xf32> to vector<4x384xf32>
    %c0_2 = arith.constant 0 : index
    %c0_3 = arith.constant 0 : index
    %c1 = arith.constant 1 : index
    %2 = vector.load %arg3[%c0_2, %c0_3, %c1] : memref<1x4x512xf32, #tpu.memory_space<vmem>>, vector<1x4x384xf32>
    %3 = vector.shape_cast %2 : vector<1x4x384xf32> to vector<4x384xf32>
    %c0_4 = arith.constant 0 : index
    %c0_5 = arith.constant 0 : index
    %c2 = arith.constant 2 : index
    %4 = vector.load %arg3[%c0_4, %c0_5, %c2] : memref<1x4x512xf32, #tpu.memory_space<vmem>>, vector<1x4x384xf32>
    %5 = vector.shape_cast %4 : vector<1x4x384xf32> to vector<4x384xf32>
    %c0_6 = arith.constant 0 : index
    %c0_7 = arith.constant 0 : index
    %c18 = arith.constant 18 : index
    %6 = vector.load %arg3[%c0_6, %c0_7, %c18] : memref<1x4x512xf32, #tpu.memory_space<vmem>>, vector<1x4x384xf32>
    %7 = vector.shape_cast %6 : vector<1x4x384xf32> to vector<4x384xf32>
    %c0_8 = arith.constant 0 : index
    %c0_9 = arith.constant 0 : index
    %c19 = arith.constant 19 : index
    %8 = vector.load %arg3[%c0_8, %c0_9, %c19] : memref<1x4x512xf32, #tpu.memory_space<vmem>>, vector<1x4x384xf32>
    %9 = vector.shape_cast %8 : vector<1x4x384xf32> to vector<4x384xf32>
    %c0_10 = arith.constant 0 : index
    %c0_11 = arith.constant 0 : index
    %c20 = arith.constant 20 : index
    %10 = vector.load %arg3[%c0_10, %c0_11, %c20] : memref<1x4x512xf32, #tpu.memory_space<vmem>>, vector<1x4x384xf32>
    %11 = vector.shape_cast %10 : vector<1x4x384xf32> to vector<4x384xf32>
    %c0_12 = arith.constant 0 : index
    %c0_13 = arith.constant 0 : index
    %c36 = arith.constant 36 : index
    %12 = vector.load %arg3[%c0_12, %c0_13, %c36] : memref<1x4x512xf32, #tpu.memory_space<vmem>>, vector<1x4x384xf32>
    %13 = vector.shape_cast %12 : vector<1x4x384xf32> to vector<4x384xf32>
    %c0_14 = arith.constant 0 : index
    %c0_15 = arith.constant 0 : index
    %c37 = arith.constant 37 : index
    %14 = vector.load %arg3[%c0_14, %c0_15, %c37] : memref<1x4x512xf32, #tpu.memory_space<vmem>>, vector<1x4x384xf32>
    %15 = vector.shape_cast %14 : vector<1x4x384xf32> to vector<4x384xf32>
    %c0_16 = arith.constant 0 : index
    %c0_17 = arith.constant 0 : index
    %c38 = arith.constant 38 : index
    %16 = vector.load %arg3[%c0_16, %c0_17, %c38] : memref<1x4x512xf32, #tpu.memory_space<vmem>>, vector<1x4x384xf32>
    %17 = vector.shape_cast %16 : vector<1x4x384xf32> to vector<4x384xf32>
    %18 = tpu.concatenate %1, %3, %5, %7, %9, %11, %13, %15, %17 in 0 : vector<4x384xf32>, vector<4x384xf32>, vector<4x384xf32>, vector<4x384xf32>, vector<4x384xf32>, vector<4x384xf32>, vector<4x384xf32>, vector<4x384xf32>, vector<4x384xf32> -> vector<36x384xf32>
    %c0_18 = arith.constant 0 : index
    %c0_19 = arith.constant 0 : index
    %19 = vector.load %arg4[%c0_18, %c0_19] : memref<4x36xf32, #tpu.memory_space<vmem>>, vector<4x36xf32>
    %cst = arith.constant dense<0.000000e+00> : vector<4x384xf32>
    %20 = tpu.matmul %19, %18, %cst {dimension_numbers = #tpu.dot_dimension_numbers<[1], [0], [0], [1], [0, 0, 1, 1], [], []>} : vector<4x36xf32>, vector<36x384xf32>, vector<4x384xf32> -> vector<4x384xf32>
    %c0_20 = arith.constant 0 : index
    %c0_21 = arith.constant 0 : index
    %21 = vector.load %arg5[%c0_20, %c0_21] : memref<4x1xf32, #tpu.memory_space<vmem>>, vector<4x1xf32>
    %22 = vector.broadcast %21 : vector<4x1xf32> to vector<4x384xf32>
    %23 = arith.addf %20, %22 : vector<4x384xf32>
    %c0_22 = arith.constant 0 : index
    %c0_23 = arith.constant 0 : index
    %24 = vector.load %arg2[%c0_22, %c0_23] : memref<1x384xf32, #tpu.memory_space<vmem>>, vector<1x384xf32>
    %25 = vector.broadcast %24 : vector<1x384xf32> to vector<4x384xf32>
    %26 = arith.mulf %23, %25 : vector<4x384xf32>
    %cst_24 = arith.constant dense<0.000000e+00> : vector<4xf32>
    %27 = vector.multi_reduction <add>, %26, %cst_24 [1] : vector<4x384xf32> to vector<4xf32>
    %28 = vector.shape_cast %27 : vector<4xf32> to vector<4x1xf32>
    %29 = arith.mulf %26, %26 : vector<4x384xf32>
    %cst_25 = arith.constant dense<0.000000e+00> : vector<4xf32>
    %30 = vector.multi_reduction <add>, %29, %cst_25 [1] : vector<4x384xf32> to vector<4xf32>
    %31 = vector.shape_cast %30 : vector<4xf32> to vector<4x1xf32>
    %cst_26 = arith.constant 3.906250e-03 : f32
    %32 = vector.broadcast %cst_26 : f32 to vector<4x1xf32>
    %33 = arith.mulf %28, %32 : vector<4x1xf32>
    %cst_27 = arith.constant 3.906250e-03 : f32
    %34 = vector.broadcast %cst_27 : f32 to vector<4x1xf32>
    %35 = arith.mulf %31, %34 : vector<4x1xf32>
    %36 = arith.mulf %33, %33 : vector<4x1xf32>
    %37 = arith.subf %35, %36 : vector<4x1xf32>
    %cst_28 = arith.constant 0.000000e+00 : f32
    %38 = vector.broadcast %cst_28 : f32 to vector<4x1xf32>
    %39 = arith.maximumf %37, %38 : vector<4x1xf32>
    %40 = vector.broadcast %33 : vector<4x1xf32> to vector<4x384xf32>
    %41 = arith.subf %23, %40 : vector<4x384xf32>
    %cst_29 = arith.constant 9.99999974E-6 : f32
    %42 = vector.broadcast %cst_29 : f32 to vector<4x1xf32>
    %43 = arith.addf %39, %42 : vector<4x1xf32>
    %44 = math.rsqrt %43 : vector<4x1xf32>
    %45 = vector.broadcast %44 : vector<4x1xf32> to vector<4x384xf32>
    %46 = arith.mulf %41, %45 : vector<4x384xf32>
    %cst_30 = arith.constant 0.000000e+00 : f32
    %47 = vector.broadcast %cst_30 : f32 to vector<4x384xf32>
    %48 = arith.maximumf %46, %47 : vector<4x384xf32>
    %c0_31 = arith.constant 0 : index
    %c0_32 = arith.constant 0 : index
    %c0_33 = arith.constant 0 : index
    %49 = vector.load %arg6[%c0_31, %c0_32, %c0_33] : memref<1x4x384xf32, #tpu.memory_space<vmem>>, vector<1x4x384xf32>
    %50 = vector.shape_cast %49 : vector<1x4x384xf32> to vector<4x384xf32>
    %51 = vector.shape_cast %48 : vector<4x384xf32> to vector<1x4x384xf32>
    tpu.vector_store %arg6[%c0_31, %c0_32, %c0_33], %51 {strides = array<i32>} : memref<1x4x384xf32, #tpu.memory_space<vmem>>, vector<1x4x384xf32>,
    return
  }
  func.func @transform_0(%arg0: i32, %arg1: i32) -> (i32, i32) {
    %c0_i32 = arith.constant 0 : i32
    %c0_i32_0 = arith.constant 0 : i32
    %c0_i32_1 = arith.constant 0 : i32
    return %c0_i32, %c0_i32_0 : i32, i32
  }
  func.func @transform_1(%arg0: i32, %arg1: i32) -> (i32, i32, i32) {
    %c0_i32 = arith.constant 0 : i32
    %c0_i32_0 = arith.constant 0 : i32
    %c0_i32_1 = arith.constant 0 : i32
    return %arg0, %c0_i32, %c0_i32_0 : i32, i32, i32
  }
  func.func @transform_2(%arg0: i32, %arg1: i32) -> (i32, i32) {
    %c0_i32 = arith.constant 0 : i32
    %c0_i32_0 = arith.constant 0 : i32
    return %arg1, %c0_i32 : i32, i32
  }
  func.func @transform_3(%arg0: i32, %arg1: i32) -> (i32, i32) {
    %c0_i32 = arith.constant 0 : i32
    %c0_i32_0 = arith.constant 0 : i32
    return %arg1, %c0_i32 : i32, i32
  }
  func.func @transform_4(%arg0: i32, %arg1: i32) -> (i32, i32, i32) {
    %c0_i32 = arith.constant 0 : i32
    %c0_i32_0 = arith.constant 0 : i32
    return %arg0, %arg1, %c0_i32 : i32, i32, i32
  }
}

module attributes {stable_mosaic.version = 11 : i64} {
  func.func @kernel(%arg0: i32, %arg1: i32, %arg2: memref<1x384xf32, #tpu.memory_space<vmem>>, %arg3: memref<1x4x512xf32, #tpu.memory_space<vmem>>, %arg4: memref<4x36xf32, #tpu.memory_space<vmem>>, %arg5: memref<4x1xf32, #tpu.memory_space<vmem>>, %arg6: memref<1x4x384xf32, #tpu.memory_space<vmem>>, %arg7: memref<1x4x384xf32, #tpu.memory_space<vmem>>) attributes {dimension_semantics = [#tpu.dimension_semantics<parallel>, #tpu.dimension_semantics<parallel>], iteration_bounds = array<i64: 2, 1>, scalar_prefetch = 0 : i64, scratch_operands = 0 : i64, tpu.core_type = #tpu.core_type<tc>, window_params = [{pipeline_mode = #tpu.pipeline_mode<synchronous>, transform_indices = @transform_0, window_bounds = array<i64: 1, 384>}, {transform_indices = @transform_1, window_bounds = array<i64: 1, 4, 512>}, {transform_indices = @transform_2, window_bounds = array<i64: 4, 36>}, {transform_indices = @transform_3, window_bounds = array<i64: 4, 1>}, {transform_indices = @transform_4, window_bounds = array<i64: 1, 4, 384>}, {transform_indices = @transform_5, window_bounds = array<i64: 1, 4, 384>}]} {
    %c0 = arith.constant 0 : index
    %c0_0 = arith.constant 0 : index
    %c0_1 = arith.constant 0 : index
    %0 = vector.load %arg3[%c0, %c0_0, %c0_1] : memref<1x4x512xf32, #tpu.memory_space<vmem>>, vector<1x4x384xf32>
    %1 = vector.shape_cast %0 : vector<1x4x384xf32> to vector<4x384xf32>
    %c0_2 = arith.constant 0 : index
    %c0_3 = arith.constant 0 : index
    %c1 = arith.constant 1 : index
    %2 = vector.load %arg3[%c0_2, %c0_3, %c1] : memref<1x4x512xf32, #tpu.memory_space<vmem>>, vector<1x4x384xf32>
    %3 = vector.shape_cast %2 : vector<1x4x384xf32> to vector<4x384xf32>
    %c0_4 = arith.constant 0 : index
    %c0_5 = arith.constant 0 : index
    %c2 = arith.constant 2 : index
    %4 = vector.load %arg3[%c0_4, %c0_5, %c2] : memref<1x4x512xf32, #tpu.memory_space<vmem>>, vector<1x4x384xf32>
    %5 = vector.shape_cast %4 : vector<1x4x384xf32> to vector<4x384xf32>
    %c0_6 = arith.constant 0 : index
    %c0_7 = arith.constant 0 : index
    %c18 = arith.constant 18 : index
    %6 = vector.load %arg3[%c0_6, %c0_7, %c18] : memref<1x4x512xf32, #tpu.memory_space<vmem>>, vector<1x4x384xf32>
    %7 = vector.shape_cast %6 : vector<1x4x384xf32> to vector<4x384xf32>
    %c0_8 = arith.constant 0 : index
    %c0_9 = arith.constant 0 : index
    %c19 = arith.constant 19 : index
    %8 = vector.load %arg3[%c0_8, %c0_9, %c19] : memref<1x4x512xf32, #tpu.memory_space<vmem>>, vector<1x4x384xf32>
    %9 = vector.shape_cast %8 : vector<1x4x384xf32> to vector<4x384xf32>
    %c0_10 = arith.constant 0 : index
    %c0_11 = arith.constant 0 : index
    %c20 = arith.constant 20 : index
    %10 = vector.load %arg3[%c0_10, %c0_11, %c20] : memref<1x4x512xf32, #tpu.memory_space<vmem>>, vector<1x4x384xf32>
    %11 = vector.shape_cast %10 : vector<1x4x384xf32> to vector<4x384xf32>
    %c0_12 = arith.constant 0 : index
    %c0_13 = arith.constant 0 : index
    %c36 = arith.constant 36 : index
    %12 = vector.load %arg3[%c0_12, %c0_13, %c36] : memref<1x4x512xf32, #tpu.memory_space<vmem>>, vector<1x4x384xf32>
    %13 = vector.shape_cast %12 : vector<1x4x384xf32> to vector<4x384xf32>
    %c0_14 = arith.constant 0 : index
    %c0_15 = arith.constant 0 : index
    %c37 = arith.constant 37 : index
    %14 = vector.load %arg3[%c0_14, %c0_15, %c37] : memref<1x4x512xf32, #tpu.memory_space<vmem>>, vector<1x4x384xf32>
    %15 = vector.shape_cast %14 : vector<1x4x384xf32> to vector<4x384xf32>
    %c0_16 = arith.constant 0 : index
    %c0_17 = arith.constant 0 : index
    %c38 = arith.constant 38 : index
    %16 = vector.load %arg3[%c0_16, %c0_17, %c38] : memref<1x4x512xf32, #tpu.memory_space<vmem>>, vector<1x4x384xf32>
    %17 = vector.shape_cast %16 : vector<1x4x384xf32> to vector<4x384xf32>
    %18 = tpu.concatenate %1, %3, %5, %7, %9, %11, %13, %15, %17 in 0 : vector<4x384xf32>, vector<4x384xf32>, vector<4x384xf32>, vector<4x384xf32>, vector<4x384xf32>, vector<4x384xf32>, vector<4x384xf32>, vector<4x384xf32>, vector<4x384xf32> -> vector<36x384xf32>
    %c0_18 = arith.constant 0 : index
    %c0_19 = arith.constant 0 : index
    %19 = vector.load %arg4[%c0_18, %c0_19] : memref<4x36xf32, #tpu.memory_space<vmem>>, vector<4x36xf32>
    %cst = arith.constant dense<0.000000e+00> : vector<4x384xf32>
    %20 = tpu.matmul %19, %18, %cst {dimension_numbers = #tpu.dot_dimension_numbers<[1], [0], [0], [1], [0, 0, 1, 1], [], []>} : vector<4x36xf32>, vector<36x384xf32>, vector<4x384xf32> -> vector<4x384xf32>
    %c0_20 = arith.constant 0 : index
    %c0_21 = arith.constant 0 : index
    %21 = vector.load %arg5[%c0_20, %c0_21] : memref<4x1xf32, #tpu.memory_space<vmem>>, vector<4x1xf32>
    %22 = vector.broadcast %21 : vector<4x1xf32> to vector<4x384xf32>
    %23 = arith.addf %20, %22 : vector<4x384xf32>
    %c0_22 = arith.constant 0 : index
    %c0_23 = arith.constant 0 : index
    %24 = vector.load %arg2[%c0_22, %c0_23] : memref<1x384xf32, #tpu.memory_space<vmem>>, vector<1x384xf32>
    %25 = vector.broadcast %24 : vector<1x384xf32> to vector<4x384xf32>
    %26 = arith.mulf %23, %25 : vector<4x384xf32>
    %cst_24 = arith.constant dense<0.000000e+00> : vector<4xf32>
    %27 = vector.multi_reduction <add>, %26, %cst_24 [1] : vector<4x384xf32> to vector<4xf32>
    %28 = vector.shape_cast %27 : vector<4xf32> to vector<4x1xf32>
    %29 = arith.mulf %26, %26 : vector<4x384xf32>
    %cst_25 = arith.constant dense<0.000000e+00> : vector<4xf32>
    %30 = vector.multi_reduction <add>, %29, %cst_25 [1] : vector<4x384xf32> to vector<4xf32>
    %31 = vector.shape_cast %30 : vector<4xf32> to vector<4x1xf32>
    %cst_26 = arith.constant 3.906250e-03 : f32
    %32 = vector.broadcast %cst_26 : f32 to vector<4x1xf32>
    %33 = arith.mulf %28, %32 : vector<4x1xf32>
    %cst_27 = arith.constant 3.906250e-03 : f32
    %34 = vector.broadcast %cst_27 : f32 to vector<4x1xf32>
    %35 = arith.mulf %31, %34 : vector<4x1xf32>
    %36 = arith.mulf %33, %33 : vector<4x1xf32>
    %37 = arith.subf %35, %36 : vector<4x1xf32>
    %cst_28 = arith.constant 0.000000e+00 : f32
    %38 = vector.broadcast %cst_28 : f32 to vector<4x1xf32>
    %39 = arith.maximumf %37, %38 : vector<4x1xf32>
    %40 = vector.broadcast %33 : vector<4x1xf32> to vector<4x384xf32>
    %41 = arith.subf %23, %40 : vector<4x384xf32>
    %cst_29 = arith.constant 9.99999974E-6 : f32
    %42 = vector.broadcast %cst_29 : f32 to vector<4x1xf32>
    %43 = arith.addf %39, %42 : vector<4x1xf32>
    %44 = math.rsqrt %43 : vector<4x1xf32>
    %45 = vector.broadcast %44 : vector<4x1xf32> to vector<4x384xf32>
    %46 = arith.mulf %41, %45 : vector<4x384xf32>
    %c0_30 = arith.constant 0 : index
    %c0_31 = arith.constant 0 : index
    %c0_32 = arith.constant 0 : index
    %47 = vector.load %arg6[%c0_30, %c0_31, %c0_32] : memref<1x4x384xf32, #tpu.memory_space<vmem>>, vector<1x4x384xf32>
    %48 = vector.shape_cast %47 : vector<1x4x384xf32> to vector<4x384xf32>
    %49 = arith.addf %46, %48 : vector<4x384xf32>
    %c0_33 = arith.constant 0 : index
    %c0_34 = arith.constant 0 : index
    %c0_35 = arith.constant 0 : index
    %50 = vector.load %arg7[%c0_33, %c0_34, %c0_35] : memref<1x4x384xf32, #tpu.memory_space<vmem>>, vector<1x4x384xf32>
    %51 = vector.shape_cast %50 : vector<1x4x384xf32> to vector<4x384xf32>
    %52 = vector.shape_cast %49 : vector<4x384xf32> to vector<1x4x384xf32>
    tpu.vector_store %arg7[%c0_33, %c0_34, %c0_35], %52 {strides = array<i32>} : memref<1x4x384xf32, #tpu.memory_space<vmem>>, vector<1x4x384xf32>,
    return
  }
  func.func @transform_0(%arg0: i32, %arg1: i32) -> (i32, i32) {
    %c0_i32 = arith.constant 0 : i32
    %c0_i32_0 = arith.constant 0 : i32
    %c0_i32_1 = arith.constant 0 : i32
    return %c0_i32, %c0_i32_0 : i32, i32
  }
  func.func @transform_1(%arg0: i32, %arg1: i32) -> (i32, i32, i32) {
    %c0_i32 = arith.constant 0 : i32
    %c0_i32_0 = arith.constant 0 : i32
    %c0_i32_1 = arith.constant 0 : i32
    return %arg0, %c0_i32, %c0_i32_0 : i32, i32, i32
  }
  func.func @transform_2(%arg0: i32, %arg1: i32) -> (i32, i32) {
    %c0_i32 = arith.constant 0 : i32
    %c0_i32_0 = arith.constant 0 : i32
    return %arg1, %c0_i32 : i32, i32
  }
  func.func @transform_3(%arg0: i32, %arg1: i32) -> (i32, i32) {
    %c0_i32 = arith.constant 0 : i32
    %c0_i32_0 = arith.constant 0 : i32
    return %arg1, %c0_i32 : i32, i32
  }
  func.func @transform_4(%arg0: i32, %arg1: i32) -> (i32, i32, i32) {
    %c0_i32 = arith.constant 0 : i32
    %c0_i32_0 = arith.constant 0 : i32
    return %arg0, %arg1, %c0_i32 : i32, i32, i32
  }
  func.func @transform_5(%arg0: i32, %arg1: i32) -> (i32, i32, i32) {
    %c0_i32 = arith.constant 0 : i32
    %c0_i32_0 = arith.constant 0 : i32
    return %arg0, %arg1, %c0_i32 : i32, i32, i32
  }
}

</mosaic_0001>

<bundles_post_ra>
// kernel: residual_block.2
= control target key start
LH: loop header
LB: loop body
LE: loop exit
PB: predicated region body
PF: predicated region fallthrough
CT: control target
= control target key end

     0   :  { %s954_s15 = smov 0   ;;  %s956_s16 = smov 0   ;;  %s1070_s0 = inlined_call_operand.vmem [shape: f32[1,384], index: 0, kind: input, shape index: {}]   ;;  %s1071_s1 = inlined_call_operand.vmem [shape: f32[2,4,512], index: 1, kind: input, shape index: {}]   ;;  %s1072_s2 = inlined_call_operand.vmem [shape: f32[4,36], index: 2, kind: input, shape index: {}]   ;;  %s1073_s3 = inlined_call_operand.vmem [shape: f32[4,1], index: 3, kind: input, shape index: {}]   ;;  %s1074_s4 = inlined_call_operand.vmem [shape: f32[2,4,384], index: 4, kind: output, shape index: {}]  }
   0x1   :  { %s958_s17 = smov 0  }
   0x2 LB: > { %s26_s18 = sadd.s32 1, %s911_s16  ;;  %p734_p0 = scmp.ge.s32.totalorder %s915_s17, 1  ;;  %s915_s17 = sphi %s958_s17, %s14_s17   ;;  %s911_s16 = sphi %s956_s16, %s1076_s16   ;;  %s907_s15 = sphi %s954_s15, %s1075_s15  }
   0x3   : > { %p28_p1 = scmp.ge.s32.totalorder %s26_s18, 2  ;;  %p194_p2 = scmp.lt.s32.totalorder %s915_s17, 3 }
   0x5   : > { %s1078_s18 = smov (%p28_p1, %s26_s18), 0  ;;  %p195_p3 = pnand %p734_p0, %p194_p2 }
   0x6   : > { %p232_p4 = scmp.lt.s32.totalorder (!%p195_p3), %s907_s15, 1  ;;  %s917_s23 = smov (!%p195_p3), 110   ;;  %v919_v9 = vmov (!%p195_p3), 0.0|0.0   ;;  %v925_v11 = vmov (!%p195_p3), 0.0   ;;  %vm926_vm0 = vmmov (!%p195_p3), 0   ;;  %v927_v12 = vmov (!%p195_p3), 0  }
   0x7   : > { %198 = sbr.rel (%p195_p3) target bundleno = 564 (0x234), region = 36  ;;  %s918_s24 = smov (!%p195_p3), 127   ;;  %773 = vmatprep.subr.bf16.mxu1 (!%p195_p3), %v919_v9  ;;  %478 = vmatprep.mubr.f32.mxu0 (!%p195_p3), %v925_v11  ;;  %v398_v13 = vld [vmem:[%s1073_s3] sm:$0xf] (!%p195_p3)  ;;  %vm273_vm1 = vcmask (!%p195_p3), 1039360   ;;  %vm290_vm2 = vcmask (!%p195_p3), 1031168  }
   0x8   : > { %s920_s25 = smov (!%p195_p3), 126   ;;  %s921_s26 = smov (!%p195_p3), 109   ;;  %762 = vmatprep.mubr.msk.f32.mxu1 (!%p195_p3), %vm926_vm0, %v925_v11  ;;  %886 = vset.pattern.permute.xlu0 (!%p195_p3), %v927_v12  ;;  %vm305_vm3 = vcmask (!%p195_p3), 900096   ;;  %vm384_vm4 = vcmask (!%p195_p3), 1043456   ;;  %vm320_vm5 = vcmask (!%p195_p3), 891904   ;;  %vm335_vm6 = vcmask (!%p195_p3), 883712  }
   0x9   : > { %s922_s27 = smov (!%p195_p3), 108   ;;  %s923_s28 = smov (!%p195_p3), 92   ;;  %vm350_vm7 = vcmask (!%p195_p3), 752640   ;;  %vm365_vm8 = vcmask (!%p195_p3), 744448   ;;  %vm380_vm9 = vcmask (!%p195_p3), 736256   ;;  %vm404_vm10 = vcmask (!%p195_p3), 293888  }
   0xa   : > { %s924_s29 = smov (!%p195_p3), 91   ;;  %s928_s30 = smov (!%p195_p3), 90  }
   0xe   : > { %s1080_s15 = smov (!%p232_p4, %s907_s15), 1 }
   0xf   : > { %s745_s19 = sshll.u32 %s1080_s15, 4  ;;  %s779_s11 = smul.u32 12, %s1080_s15 }
  0x10   : > { %s978_s22 = scalar_lea.vmem %s1071_s1, %s745_s19 }
  0x11   : > { %v981_v0 = vld [vmem:[%s978_s22] sm:$0xff]  ;;  %v257_v1 = vld [vmem:[%s978_s22 + $0x8] sm:$0xff]  ;;  %s253_s14 = scalar_lea.vmem %s1074_s4, %s779_s11 }
  0x12   : > { %v264_v2 = vcombine.low %v257_v1, %v257_v1  ;;  %v986_v3 = vcombine.high %v981_v0, %v981_v0  ;;  %v263_v4 = vcombine.low %v981_v0, %v981_v0  ;;  %v281_v8 = vcombine.high %v257_v1, %v257_v1  ;;  %v255_v39 = vld [vmem:[%s978_s22 + $0x8] sm:$0xf] }
  0x14   : > { %v826_v5 = vpack.i.bf16 %v264_v2, %v981_v0  ;;  %v821_v6 = vpack.i.bf16 %v257_v1, %v986_v3  ;;  %v831_v7 = vpack.i.bf16 %v257_v1, %v263_v4  ;;  %v836_v10 = vpack.i.bf16 %v281_v8, %v981_v0 }
  0x16   : > { %827 = vrot.lane.b32.xlu1 %v826_v5, %s917_s23  ;;  %817 = vrot.lane.b32.xlu0 %v826_v5, %s918_s24 }
  0x1a   : > { %822 = vrot.lane.b32.xlu0 %v821_v6, %s920_s25  ;;  %832 = vrot.lane.b32.xlu1 %v831_v7, %s918_s24 }
  0x1e   : > { %837 = vrot.lane.b32.xlu0 %v836_v10, %s920_s25  ;;  %842 = vrot.lane.b32.xlu1 %v831_v7, %s917_s23 }
  0x22   : > { %847 = vrot.lane.b32.xlu0 %v821_v6, %s921_s26  ;;  %852 = vrot.lane.b32.xlu1 %v826_v5, %s922_s27 }
  0x26   : > { %857 = vrot.lane.b32.xlu0 %v821_v6, %s923_s28  ;;  %862 = vrot.lane.b32.xlu1 %v826_v5, %s924_s29 }
  0x2a   : > { %867 = vrot.lane.b32.xlu0 %v836_v10, %s921_s26  ;;  %872 = vrot.lane.b32.xlu1 %v831_v7, %s922_s27 }
  0x2e   : > { %877 = vrot.lane.b32.xlu0 %v836_v10, %s923_s28  ;;  %882 = vrot.lane.b32.xlu1 %v831_v7, %s924_s29 }
  0x32   : > { %374 = vrot.lane.b32.xlu0 %v986_v3, %s928_s30  ;;  %376 = vrot.lane.b32.xlu1 %v257_v1, %s928_s30 }
  0x36   : > { %372 = vrot.lane.b32.xlu0 %v981_v0, %s928_s30  ;;  %378 = vrot.lane.b32.xlu1 %v281_v8, %s928_s30 }
  0x3a   : > { %401 = vperm.xlu0 %886, %v398_v13  }
  0x88   : > { %v828_v14 = vpop.permute.xlu1 %827  ;;  %v818_v15 = vpop.permute.xlu0 %817 }
  0x89   : > { %v820_v16 = vunpack.i.h.bf16 %v818_v15  ;;  %v819_v17 = vunpack.i.l.bf16 %v818_v15  ;;  %v830_v18 = vunpack.i.h.bf16 %v828_v14  ;;  %v829_v19 = vunpack.i.l.bf16 %v828_v14 }
  0x8b   : > { %v275_v22 = vsel %vm273_vm1, %v819_v17, %v820_v16  ;;  %v307_v28 = vsel %vm305_vm3, %v829_v19, %v830_v18 }
  0x8c   : > { %v823_v20 = vpop.permute.xlu0 %822  ;;  %v833_v21 = vpop.permute.xlu1 %832  ;;  %v386_v31 = vsel %vm384_vm4, %v986_v3, %v275_v22 }
  0x8d   : > { %v825_v23 = vunpack.i.h.bf16 %v823_v20  ;;  %v824_v24 = vunpack.i.l.bf16 %v823_v20  ;;  %v835_v25 = vunpack.i.h.bf16 %v833_v21  ;;  %v834_v26 = vunpack.i.l.bf16 %v833_v21 }
  0x8f   : > { %v292_v27 = vsel %vm290_vm2, %v824_v24, %v825_v23  ;;  %v274_v33 = vsel %vm273_vm1, %v834_v26, %v819_v17  ;;  %v276_v34 = vsel %vm273_vm1, %v820_v16, %v835_v25 }
  0x90   : > { %v838_v29 = vpop.permute.xlu0 %837  ;;  %v843_v30 = vpop.permute.xlu1 %842  ;;  %v389_v32 = vsel %vm384_vm4, %v292_v27, %v307_v28  ;;  %v385_v47 = vsel %vm384_vm4, %v981_v0, %v274_v33  ;;  %v387_v49 = vsel %vm384_vm4, %v255_v39, %v276_v34 }
  0x91   : > { %v840_v35 = vunpack.i.h.bf16 %v838_v29  ;;  %v839_v36 = vunpack.i.l.bf16 %v838_v29  ;;  %v845_v37 = vunpack.i.h.bf16 %v843_v30  ;;  %v844_v38 = vunpack.i.l.bf16 %v843_v30 }
  0x92   : > { %v765_v40 = vpack.c.bf16 %v389_v32, %v386_v31 }
  0x93   : > { %v291_v41 = vsel %vm290_vm2, %v839_v36, %v824_v24  ;;  %v306_v42 = vsel %vm305_vm3, %v844_v38, %v829_v19  ;;  %v293_v43 = vsel %vm290_vm2, %v825_v23, %v840_v35  ;;  %v308_v44 = vsel %vm305_vm3, %v830_v18, %v845_v37 }
  0x94   : > { %766 = vmatprep.subr.bf16.mxu0 %v765_v40  ;;  %v848_v45 = vpop.permute.xlu0 %847  ;;  %v853_v46 = vpop.permute.xlu1 %852  ;;  %v388_v48 = vsel %vm384_vm4, %v291_v41, %v306_v42  ;;  %v390_v50 = vsel %vm384_vm4, %v293_v43, %v308_v44  ;;  %v397_v40 = vld [vmem:[%s1072_s2] sm:$0xf]  ;;  %v557_v41 = vlaneseq }
  0x95   : > { %v850_v51 = vunpack.i.h.bf16 %v848_v45  ;;  %v849_v52 = vunpack.i.l.bf16 %v848_v45  ;;  %v855_v53 = vunpack.i.h.bf16 %v853_v46  ;;  %v854_v54 = vunpack.i.l.bf16 %v853_v46 }
  0x96   : > { %v767_v55 = vpack.c.bf16 %v388_v48, %v385_v47  ;;  %v774_v56 = vpack.c.bf16 %v390_v50, %v387_v49  ;;  %v558_v42 = vshrl.u32 %v557_v41, 7 }
  0x97   : > { %v322_v57 = vsel %vm320_vm5, %v849_v52, %v850_v51  ;;  %v337_v58 = vsel %vm335_vm6, %v854_v54, %v855_v53 }
  0x98   : > { %768 = vmatpush1.bf16.msra.mxu0 %v767_v55  ;;  %775 = vmatpush3.bf16.msra.mxu1 %v774_v56  ;;  %v858_v59 = vpop.permute.xlu0 %857  ;;  %v863_v60 = vpop.permute.xlu1 %862  ;;  %v392_v5 = vsel %vm384_vm4, %v322_v57, %v337_v58  ;;  %v559_v43 = vsub.s32 0, %v558_v42  ;;  %v567_v44 = vsub.s32 2, %v558_v42  ;;  %v563_v45 = vsub.s32 1, %v558_v42 }
  0x99   : > { %v860_v61 = vunpack.i.h.bf16 %v858_v59  ;;  %v859_v62 = vunpack.i.l.bf16 %v858_v59  ;;  %v865_v63 = vunpack.i.h.bf16 %v863_v60  ;;  %v864_v0 = vunpack.i.l.bf16 %v863_v60  ;;  %776 = vmatprep.subr.bf16.mxu1 %v919_v9 }
  0x9b   : > { %v352_v1 = vsel %vm350_vm7, %v859_v62, %v860_v61  ;;  %v367_v2 = vsel %vm365_vm8, %v864_v0, %v865_v63 }
  0x9c   : > { %v868_v3 = vpop.permute.xlu0 %867  ;;  %v873_v4 = vpop.permute.xlu1 %872  ;;  %v395_v6 = vsel %vm384_vm4, %v352_v1, %v367_v2 }
  0x9d   : > { %v870_v7 = vunpack.i.h.bf16 %v868_v3  ;;  %v869_v8 = vunpack.i.l.bf16 %v868_v3  ;;  %v875_v10 = vunpack.i.h.bf16 %v873_v4  ;;  %v874_v12 = vunpack.i.l.bf16 %v873_v4 }
  0x9e   : > { %v769_v13 = vpack.c.bf16 %v395_v6, %v392_v5 }
  0x9f   : > { %v321_v14 = vsel %vm320_vm5, %v869_v8, %v849_v52  ;;  %v323_v15 = vsel %vm320_vm5, %v850_v51, %v870_v7  ;;  %v336_v9 = vsel %vm335_vm6, %v874_v12, %v854_v54  ;;  %v338_v16 = vsel %vm335_vm6, %v855_v53, %v875_v10 }
  0xa0   : > { %770 = vmatprep.subr.bf16.mxu0 %v769_v13  ;;  %v878_v17 = vpop.permute.xlu0 %877  ;;  %v883_v18 = vpop.permute.xlu1 %882  ;;  %v391_v29 = vsel %vm384_vm4, %v321_v14, %v336_v9  ;;  %v393_v31 = vsel %vm384_vm4, %v323_v15, %v338_v16 }
  0xa1   : > { %v880_v19 = vunpack.i.h.bf16 %v878_v17  ;;  %v879_v20 = vunpack.i.l.bf16 %v878_v17  ;;  %v885_v21 = vunpack.i.h.bf16 %v883_v18  ;;  %v884_v22 = vunpack.i.l.bf16 %v883_v18 }
  0xa3   : > { %v351_v23 = vsel %vm350_vm7, %v879_v20, %v859_v62  ;;  %v353_v24 = vsel %vm350_vm7, %v860_v61, %v880_v19  ;;  %v366_v25 = vsel %vm365_vm8, %v884_v22, %v864_v0  ;;  %v368_v26 = vsel %vm365_vm8, %v865_v63, %v885_v21 }
  0xa4   : > { %v375_v27 = vpop.permute.xlu0 %374  ;;  %v377_v28 = vpop.permute.xlu1 %376  ;;  %v394_v30 = vsel %vm384_vm4, %v351_v23, %v366_v25  ;;  %v396_v32 = vsel %vm384_vm4, %v353_v24, %v368_v26 }
  0xa5   : > { %v382_v33 = vsel %vm380_vm9, %v375_v27, %v377_v28  ;;  %v771_v34 = vpack.c.bf16 %v394_v30, %v391_v29  ;;  %v777_v35 = vpack.c.bf16 %v396_v32, %v393_v31 }
  0xa7   : > { %772 = vmatpush1.bf16.msra.mxu0 %v771_v34  ;;  %778 = vmatpush3.bf16.msra.mxu1 %v777_v35 }
  0xa8   : > { %v373_v36 = vpop.permute.xlu0 %372  ;;  %v379_v37 = vpop.permute.xlu1 %378  ;;  %738 = vmatprep.subr.msk.mxu0 %vm384_vm4, %v382_v33  ;;  %760 = vmatprep.subr.mxu1 %v925_v11  ;;  %v555_v11 = vld [vmem:[%s1070_s0] sm:$0x7] }
  0xa9   : > { %v381_v38 = vsel %vm380_vm9, %v373_v36, %v375_v27  ;;  %v383_v39 = vsel %vm380_vm9, %v377_v28, %v379_v37  ;;  %v560_v47 = vrot.slane %v555_v11, %v559_v43  ;;  %v568_v48 = vrot.slane %v555_v11, %v567_v44 }
  0xaa   : > { %v564_v50 = vrot.slane %v555_v11, %v563_v45 }
  0xab   : > { %739 = vmatpush1.msk.msra.mxu0 %vm384_vm4, %v381_v38  ;;  %761 = vmatpush3.msk.msra.mxu1 %vm384_vm4, %v383_v39 }
  0xac   : > { %740 = vmatmul.mubr.msk.f32.vlgmr.msra.gmra.mrb[0].mxu0 %vm404_vm10, %v397_v40  ;;  %763 = vmatmul.mubr.msk.f32.vlgmr.msra.gmra.mrb[0].mxu1 %vm404_vm10, %v397_v40 }
  0xb9   : > { %v402_v46 = vpop.permute.xlu0 %401 }
 0x17f   : > { %v480_v49 = vpop.f32.mrb[0].mxu0  ;;  %v551_v51 = vpop.f32.mrb[0].mxu1 }
 0x180   : > { %v481_v52 = vadd.f32 %v480_v49, %v402_v46  ;;  %v482_v53 = vpop.f32.mrb[1].mxu0  ;;  %v552_v54 = vadd.f32 %v551_v51, %v402_v46  ;;  %v764_v55 = vpop.f32.mrb[1].mxu1 }
 0x181   : > { %v483_v56 = vadd.f32 %v482_v53, %v402_v46 }
 0x182   : > { %v572_v57 = vmul.f32 %v560_v47, %v481_v52  ;;  %v574_v58 = vmul.f32 %v568_v48, %v552_v54 }
 0x183   : > { %v573_v59 = vmul.f32 %v564_v50, %v483_v56 }
 0x184   : > { %v582_v60 = vmul.f32 %v572_v57, %v572_v57  ;;  %v575_v61 = vsel %vm384_vm4, %v572_v57, 0.0  ;;  %v584_v0 = vmul.f32 %v574_v58, %v574_v58  ;;  %v578_v3 = vsel %vm384_vm4, %v574_v58, 0.0 }
 0x185   : > { %v583_v62 = vmul.f32 %v573_v59, %v573_v59  ;;  %v576_v63 = vsel %vm384_vm4, %v573_v59, 0.0 }
 0x186   : > { %v577_v1 = vadd.f32 %v576_v63, %v575_v61  ;;  %v585_v2 = vsel %vm384_vm4, %v582_v60, 0.0  ;;  %v588_v7 = vsel %vm384_vm4, %v584_v0, 0.0 }
 0x187   : > { %v586_v4 = vsel %vm384_vm4, %v583_v62, 0.0 }
 0x188   : > { %v579_v5 = vadd.f32 %v578_v3, %v577_v1  ;;  %v587_v6 = vadd.f32 %v586_v4, %v585_v2 }
 0x18a   : > { %580 = vadd.xlane.f32.xlu1 %v579_v5  ;;  %v589_v8 = vadd.f32 %v588_v7, %v587_v6 }
 0x18c   : > { %590 = vadd.xlane.f32.xlu0 %v589_v8 }
 0x217   : > { %v581_v10 = vpop.xlane.xlu1 %580 }
 0x218   : > { %v592_v12 = vmul.f32 0.00390625, %v581_v10 }
 0x219   : > { %v591_v13 = vpop.xlane.xlu0 %590 }
 0x21a   : > { %v593_v14 = vmul.f32 0.00390625, %v591_v13  ;;  %v594_v15 = vmul.f32 %v592_v12, %v592_v12  ;;  %v597_v18 = vsub.f32 %v481_v52, %v592_v12  ;;  %v598_v19 = vsub.f32 %v483_v56, %v592_v12 }
 0x21b   : > { %v599_v20 = vsub.f32 %v552_v54, %v592_v12 }
 0x21c   : > { %v595_v9 = vsub.f32 %v593_v14, %v594_v15 }
 0x21e   : > { %v596_v16 = vmax.f32 %v595_v9, 0.0 }
 0x220   : > { %v600_v17 = vadd.f32 1e-05, %v596_v16 }
 0x222   : > { %891 = vrsqrt.f32 %v600_v17 }
 0x22c   : > { %v892_v21 = vpop.eup %891 }
 0x22d   : > { %v602_v22 = vmul.f32 %v892_v21, %v597_v18  ;;  %v603_v23 = vmul.f32 %v892_v21, %v598_v19  ;;  %v604_v24 = vmul.f32 %v892_v21, %v599_v20 }
 0x22f   : > { %v605_v25 = vmax.f32 %v602_v22, 0.0  ;;  %v606_v26 = vmax.f32 %v603_v23, 0.0  ;;  %v607_v27 = vmax.f32 %v604_v24, 0.0 }
 0x231   : > { %v610_v28 = vcombine.low %v605_v25, %v606_v26  ;;  %613 = vst [vmem:[%s253_s14 + $0x8] sm:$0xf] %v607_v27 }
 0x233   : > { %612 = vst [vmem:[%s253_s14] sm:$0xff] %v610_v28 }
 0x234 PF: > { %s14_s17 = sadd.s32 1, %s915_s17   ;;  %s1075_s15 = smov %s911_s16 }
 0x235   : > { %p11_p5 = scmp.ge.s32.totalorder %s14_s17, 4   ;;  %s1076_s16 = smov %s1078_s18 }
 0x237   :  { %13 = sbr.rel (!%p11_p5) target bundleno = 2 (0x2), region = 72 }

// kernel: residual_block.3
= control target key start
LH: loop header
LB: loop body
LE: loop exit
PB: predicated region body
PF: predicated region fallthrough
CT: control target
= control target key end

     0   :  { %s1048_s18 = smov 0   ;;  %s1050_s19 = smov 0   ;;  %s1167_s0 = inlined_call_operand.vmem [shape: f32[1,384], index: 0, kind: input, shape index: {}]   ;;  %s1168_s1 = inlined_call_operand.vmem [shape: f32[2,4,512], index: 1, kind: input, shape index: {}]   ;;  %s1169_s2 = inlined_call_operand.vmem [shape: f32[4,36], index: 2, kind: input, shape index: {}]   ;;  %s1170_s3 = inlined_call_operand.vmem [shape: f32[4,1], index: 3, kind: input, shape index: {}]   ;;  %s1171_s4 = inlined_call_operand.vmem [shape: f32[2,4,384], index: 4, kind: input, shape index: {}]   ;;  %s1172_s5 = inlined_call_operand.vmem [shape: f32[2,4,384], index: 5, kind: output, shape index: {}]  }
   0x1   :  { %s1052_s20 = smov 0  }
   0x2 LB: > { %s27_s21 = sadd.s32 1, %s1000_s19  ;;  %p821_p0 = scmp.ge.s32.totalorder %s1004_s20, 1  ;;  %s1004_s20 = sphi %s1052_s20, %s15_s20   ;;  %s1000_s19 = sphi %s1050_s19, %s1174_s19   ;;  %s996_s18 = sphi %s1048_s18, %s1173_s18  }
   0x3   : > { %p29_p1 = scmp.ge.s32.totalorder %s27_s21, 2  ;;  %p235_p2 = scmp.lt.s32.totalorder %s1004_s20, 3 }
   0x5   : > { %s1176_s21 = smov (%p29_p1, %s27_s21), 0  ;;  %p236_p3 = pnand %p821_p0, %p235_p2 }
   0x6   : > { %p284_p4 = scmp.lt.s32.totalorder (!%p236_p3), %s996_s18, 1  ;;  %s1006_s26 = smov (!%p236_p3), 110   ;;  %v1008_v9 = vmov (!%p236_p3), 0.0|0.0   ;;  %v1014_v11 = vmov (!%p236_p3), 0.0   ;;  %vm1015_vm0 = vmmov (!%p236_p3), 0   ;;  %v1016_v12 = vmov (!%p236_p3), 0  }
   0x7   : > { %239 = sbr.rel (%p236_p3) target bundleno = 564 (0x234), region = 40  ;;  %s1007_s27 = smov (!%p236_p3), 127   ;;  %861 = vmatprep.subr.bf16.mxu1 (!%p236_p3), %v1008_v9  ;;  %539 = vmatprep.mubr.f32.mxu0 (!%p236_p3), %v1014_v11  ;;  %v459_v13 = vld [vmem:[%s1170_s3] sm:$0xf] (!%p236_p3)  ;;  %vm334_vm1 = vcmask (!%p236_p3), 1039360   ;;  %vm351_vm2 = vcmask (!%p236_p3), 1031168  }
   0x8   : > { %s1009_s28 = smov (!%p236_p3), 126   ;;  %s1010_s29 = smov (!%p236_p3), 109   ;;  %850 = vmatprep.mubr.msk.f32.mxu1 (!%p236_p3), %vm1015_vm0, %v1014_v11  ;;  %974 = vset.pattern.permute.xlu0 (!%p236_p3), %v1016_v12  ;;  %vm366_vm3 = vcmask (!%p236_p3), 900096   ;;  %vm445_vm4 = vcmask (!%p236_p3), 1043456   ;;  %vm381_vm5 = vcmask (!%p236_p3), 891904   ;;  %vm396_vm6 = vcmask (!%p236_p3), 883712  }
   0x9   : > { %s1011_s30 = smov (!%p236_p3), 108   ;;  %s1012_s6 = smov (!%p236_p3), 92   ;;  %vm411_vm7 = vcmask (!%p236_p3), 752640   ;;  %vm426_vm8 = vcmask (!%p236_p3), 744448   ;;  %vm441_vm9 = vcmask (!%p236_p3), 736256   ;;  %vm465_vm10 = vcmask (!%p236_p3), 293888  }
   0xa   : > { %s1013_s7 = smov (!%p236_p3), 91   ;;  %s1017_s8 = smov (!%p236_p3), 90  }
   0xe   : > { %s1178_s18 = smov (!%p284_p4, %s996_s18), 1 }
   0xf   : > { %s833_s22 = sshll.u32 %s1178_s18, 4  ;;  %s867_s15 = smul.u32 12, %s1178_s18 }
  0x10   : > { %s1072_s25 = scalar_lea.vmem %s1168_s1, %s833_s22 }
  0x11   : > { %v1075_v0 = vld [vmem:[%s1072_s25] sm:$0xff]  ;;  %v318_v1 = vld [vmem:[%s1072_s25 + $0x8] sm:$0xff]  ;;  %s305_s22 = scalar_lea.vmem %s1171_s4, %s867_s15 }
  0x12   : > { %v325_v2 = vcombine.low %v318_v1, %v318_v1  ;;  %v1080_v3 = vcombine.high %v1075_v0, %v1075_v0  ;;  %v324_v4 = vcombine.low %v1075_v0, %v1075_v0  ;;  %v342_v8 = vcombine.high %v318_v1, %v318_v1  ;;  %v316_v39 = vld [vmem:[%s1072_s25 + $0x8] sm:$0xf]  ;;  %s314_s25 = scalar_lea.vmem %s1172_s5, %s867_s15 }
  0x14   : > { %v914_v5 = vpack.i.bf16 %v325_v2, %v1075_v0  ;;  %v909_v6 = vpack.i.bf16 %v318_v1, %v1080_v3  ;;  %v919_v7 = vpack.i.bf16 %v318_v1, %v324_v4  ;;  %v924_v10 = vpack.i.bf16 %v342_v8, %v1075_v0 }
  0x16   : > { %915 = vrot.lane.b32.xlu1 %v914_v5, %s1006_s26  ;;  %905 = vrot.lane.b32.xlu0 %v914_v5, %s1007_s27 }
  0x1a   : > { %910 = vrot.lane.b32.xlu0 %v909_v6, %s1009_s28  ;;  %920 = vrot.lane.b32.xlu1 %v919_v7, %s1007_s27 }
  0x1e   : > { %925 = vrot.lane.b32.xlu0 %v924_v10, %s1009_s28  ;;  %930 = vrot.lane.b32.xlu1 %v919_v7, %s1006_s26 }
  0x22   : > { %935 = vrot.lane.b32.xlu0 %v909_v6, %s1010_s29  ;;  %940 = vrot.lane.b32.xlu1 %v914_v5, %s1011_s30 }
  0x26   : > { %945 = vrot.lane.b32.xlu0 %v909_v6, %s1012_s6  ;;  %950 = vrot.lane.b32.xlu1 %v914_v5, %s1013_s7 }
  0x2a   : > { %955 = vrot.lane.b32.xlu0 %v924_v10, %s1010_s29  ;;  %960 = vrot.lane.b32.xlu1 %v919_v7, %s1011_s30 }
  0x2e   : > { %965 = vrot.lane.b32.xlu0 %v924_v10, %s1012_s6  ;;  %970 = vrot.lane.b32.xlu1 %v919_v7, %s1013_s7 }
  0x32   : > { %435 = vrot.lane.b32.xlu0 %v1080_v3, %s1017_s8  ;;  %437 = vrot.lane.b32.xlu1 %v318_v1, %s1017_s8 }
  0x36   : > { %433 = vrot.lane.b32.xlu0 %v1075_v0, %s1017_s8  ;;  %439 = vrot.lane.b32.xlu1 %v342_v8, %s1017_s8 }
  0x3a   : > { %462 = vperm.xlu0 %974, %v459_v13  }
  0x88   : > { %v916_v14 = vpop.permute.xlu1 %915  ;;  %v906_v15 = vpop.permute.xlu0 %905 }
  0x89   : > { %v908_v16 = vunpack.i.h.bf16 %v906_v15  ;;  %v907_v17 = vunpack.i.l.bf16 %v906_v15  ;;  %v918_v18 = vunpack.i.h.bf16 %v916_v14  ;;  %v917_v19 = vunpack.i.l.bf16 %v916_v14 }
  0x8b   : > { %v336_v22 = vsel %vm334_vm1, %v907_v17, %v908_v16  ;;  %v368_v28 = vsel %vm366_vm3, %v917_v19, %v918_v18 }
  0x8c   : > { %v911_v20 = vpop.permute.xlu0 %910  ;;  %v921_v21 = vpop.permute.xlu1 %920  ;;  %v447_v31 = vsel %vm445_vm4, %v1080_v3, %v336_v22 }
  0x8d   : > { %v913_v23 = vunpack.i.h.bf16 %v911_v20  ;;  %v912_v24 = vunpack.i.l.bf16 %v911_v20  ;;  %v923_v25 = vunpack.i.h.bf16 %v921_v21  ;;  %v922_v26 = vunpack.i.l.bf16 %v921_v21 }
  0x8f   : > { %v353_v27 = vsel %vm351_vm2, %v912_v24, %v913_v23  ;;  %v335_v33 = vsel %vm334_vm1, %v922_v26, %v907_v17  ;;  %v337_v34 = vsel %vm334_vm1, %v908_v16, %v923_v25 }
  0x90   : > { %v926_v29 = vpop.permute.xlu0 %925  ;;  %v931_v30 = vpop.permute.xlu1 %930  ;;  %v450_v32 = vsel %vm445_vm4, %v353_v27, %v368_v28  ;;  %v446_v47 = vsel %vm445_vm4, %v1075_v0, %v335_v33  ;;  %v448_v49 = vsel %vm445_vm4, %v316_v39, %v337_v34 }
  0x91   : > { %v928_v35 = vunpack.i.h.bf16 %v926_v29  ;;  %v927_v36 = vunpack.i.l.bf16 %v926_v29  ;;  %v933_v37 = vunpack.i.h.bf16 %v931_v30  ;;  %v932_v38 = vunpack.i.l.bf16 %v931_v30 }
  0x92   : > { %v853_v40 = vpack.c.bf16 %v450_v32, %v447_v31 }
  0x93   : > { %v352_v41 = vsel %vm351_vm2, %v927_v36, %v912_v24  ;;  %v367_v42 = vsel %vm366_vm3, %v932_v38, %v917_v19  ;;  %v354_v43 = vsel %vm351_vm2, %v913_v23, %v928_v35  ;;  %v369_v44 = vsel %vm366_vm3, %v918_v18, %v933_v37 }
  0x94   : > { %854 = vmatprep.subr.bf16.mxu0 %v853_v40  ;;  %v936_v45 = vpop.permute.xlu0 %935  ;;  %v941_v46 = vpop.permute.xlu1 %940  ;;  %v449_v48 = vsel %vm445_vm4, %v352_v41, %v367_v42  ;;  %v451_v50 = vsel %vm445_vm4, %v354_v43, %v369_v44  ;;  %v458_v40 = vld [vmem:[%s1169_s2] sm:$0xf]  ;;  %v618_v41 = vlaneseq }
  0x95   : > { %v938_v51 = vunpack.i.h.bf16 %v936_v45  ;;  %v937_v52 = vunpack.i.l.bf16 %v936_v45  ;;  %v943_v53 = vunpack.i.h.bf16 %v941_v46  ;;  %v942_v54 = vunpack.i.l.bf16 %v941_v46 }
  0x96   : > { %v855_v55 = vpack.c.bf16 %v449_v48, %v446_v47  ;;  %v862_v56 = vpack.c.bf16 %v451_v50, %v448_v49  ;;  %v619_v42 = vshrl.u32 %v618_v41, 7 }
  0x97   : > { %v383_v57 = vsel %vm381_vm5, %v937_v52, %v938_v51  ;;  %v398_v58 = vsel %vm396_vm6, %v942_v54, %v943_v53 }
  0x98   : > { %856 = vmatpush1.bf16.msra.mxu0 %v855_v55  ;;  %863 = vmatpush3.bf16.msra.mxu1 %v862_v56  ;;  %v946_v59 = vpop.permute.xlu0 %945  ;;  %v951_v60 = vpop.permute.xlu1 %950  ;;  %v453_v5 = vsel %vm445_vm4, %v383_v57, %v398_v58  ;;  %v620_v43 = vsub.s32 0, %v619_v42  ;;  %v628_v44 = vsub.s32 2, %v619_v42  ;;  %v624_v45 = vsub.s32 1, %v619_v42 }
  0x99   : > { %v948_v61 = vunpack.i.h.bf16 %v946_v59  ;;  %v947_v62 = vunpack.i.l.bf16 %v946_v59  ;;  %v953_v63 = vunpack.i.h.bf16 %v951_v60  ;;  %v952_v0 = vunpack.i.l.bf16 %v951_v60  ;;  %864 = vmatprep.subr.bf16.mxu1 %v1008_v9 }
  0x9b   : > { %v413_v1 = vsel %vm411_vm7, %v947_v62, %v948_v61  ;;  %v428_v2 = vsel %vm426_vm8, %v952_v0, %v953_v63 }
  0x9c   : > { %v956_v3 = vpop.permute.xlu0 %955  ;;  %v961_v4 = vpop.permute.xlu1 %960  ;;  %v456_v6 = vsel %vm445_vm4, %v413_v1, %v428_v2 }
  0x9d   : > { %v958_v7 = vunpack.i.h.bf16 %v956_v3  ;;  %v957_v8 = vunpack.i.l.bf16 %v956_v3  ;;  %v963_v10 = vunpack.i.h.bf16 %v961_v4  ;;  %v962_v12 = vunpack.i.l.bf16 %v961_v4 }
  0x9e   : > { %v857_v13 = vpack.c.bf16 %v456_v6, %v453_v5 }
  0x9f   : > { %v382_v14 = vsel %vm381_vm5, %v957_v8, %v937_v52  ;;  %v384_v15 = vsel %vm381_vm5, %v938_v51, %v958_v7  ;;  %v397_v9 = vsel %vm396_vm6, %v962_v12, %v942_v54  ;;  %v399_v16 = vsel %vm396_vm6, %v943_v53, %v963_v10 }
  0xa0   : > { %858 = vmatprep.subr.bf16.mxu0 %v857_v13  ;;  %v966_v17 = vpop.permute.xlu0 %965  ;;  %v971_v18 = vpop.permute.xlu1 %970  ;;  %v452_v29 = vsel %vm445_vm4, %v382_v14, %v397_v9  ;;  %v454_v31 = vsel %vm445_vm4, %v384_v15, %v399_v16 }
  0xa1   : > { %v968_v19 = vunpack.i.h.bf16 %v966_v17  ;;  %v967_v20 = vunpack.i.l.bf16 %v966_v17  ;;  %v973_v21 = vunpack.i.h.bf16 %v971_v18  ;;  %v972_v22 = vunpack.i.l.bf16 %v971_v18  ;;  %v666_v18 = vld [vmem:[%s305_s22] sm:$0xff] }
  0xa3   : > { %v412_v23 = vsel %vm411_vm7, %v967_v20, %v947_v62  ;;  %v414_v24 = vsel %vm411_vm7, %v948_v61, %v968_v19  ;;  %v427_v25 = vsel %vm426_vm8, %v972_v22, %v952_v0  ;;  %v429_v26 = vsel %vm426_vm8, %v953_v63, %v973_v21 }
  0xa4   : > { %v436_v27 = vpop.permute.xlu0 %435  ;;  %v438_v28 = vpop.permute.xlu1 %437  ;;  %v455_v30 = vsel %vm445_vm4, %v412_v23, %v427_v25  ;;  %v457_v32 = vsel %vm445_vm4, %v414_v24, %v429_v26  ;;  %v669_v22 = vcombine.high %v666_v18, %v666_v18  ;;  %v667_v24 = vld [vmem:[%s305_s22 + $0x8] sm:$0xf] }
  0xa5   : > { %v443_v33 = vsel %vm441_vm9, %v436_v27, %v438_v28  ;;  %v859_v34 = vpack.c.bf16 %v455_v30, %v452_v29  ;;  %v865_v35 = vpack.c.bf16 %v457_v32, %v454_v31 }
  0xa7   : > { %860 = vmatpush1.bf16.msra.mxu0 %v859_v34  ;;  %866 = vmatpush3.bf16.msra.mxu1 %v865_v35 }
  0xa8   : > { %v434_v36 = vpop.permute.xlu0 %433  ;;  %v440_v37 = vpop.permute.xlu1 %439  ;;  %826 = vmatprep.subr.msk.mxu0 %vm445_vm4, %v443_v33  ;;  %848 = vmatprep.subr.mxu1 %v1014_v11  ;;  %v616_v11 = vld [vmem:[%s1167_s0] sm:$0x7] }
  0xa9   : > { %v442_v38 = vsel %vm441_vm9, %v434_v36, %v436_v27  ;;  %v444_v39 = vsel %vm441_vm9, %v438_v28, %v440_v37  ;;  %v621_v47 = vrot.slane %v616_v11, %v620_v43  ;;  %v629_v48 = vrot.slane %v616_v11, %v628_v44 }
  0xaa   : > { %v625_v50 = vrot.slane %v616_v11, %v624_v45 }
  0xab   : > { %827 = vmatpush1.msk.msra.mxu0 %vm445_vm4, %v442_v38  ;;  %849 = vmatpush3.msk.msra.mxu1 %vm445_vm4, %v444_v39 }
  0xac   : > { %828 = vmatmul.mubr.msk.f32.vlgmr.msra.gmra.mrb[0].mxu0 %vm465_vm10, %v458_v40  ;;  %851 = vmatmul.mubr.msk.f32.vlgmr.msra.gmra.mrb[0].mxu1 %vm465_vm10, %v458_v40 }
  0xb9   : > { %v463_v46 = vpop.permute.xlu0 %462 }
 0x17f   : > { %v541_v49 = vpop.f32.mrb[0].mxu0  ;;  %v612_v51 = vpop.f32.mrb[0].mxu1 }
 0x180   : > { %v542_v52 = vadd.f32 %v541_v49, %v463_v46  ;;  %v543_v53 = vpop.f32.mrb[1].mxu0  ;;  %v613_v54 = vadd.f32 %v612_v51, %v463_v46  ;;  %v852_v55 = vpop.f32.mrb[1].mxu1 }
 0x181   : > { %v544_v56 = vadd.f32 %v543_v53, %v463_v46 }
 0x182   : > { %v633_v57 = vmul.f32 %v621_v47, %v542_v52  ;;  %v635_v58 = vmul.f32 %v629_v48, %v613_v54 }
 0x183   : > { %v634_v59 = vmul.f32 %v625_v50, %v544_v56 }
 0x184   : > { %v643_v60 = vmul.f32 %v633_v57, %v633_v57  ;;  %v636_v61 = vsel %vm445_vm4, %v633_v57, 0.0  ;;  %v645_v0 = vmul.f32 %v635_v58, %v635_v58  ;;  %v639_v3 = vsel %vm445_vm4, %v635_v58, 0.0 }
 0x185   : > { %v644_v62 = vmul.f32 %v634_v59, %v634_v59  ;;  %v637_v63 = vsel %vm445_vm4, %v634_v59, 0.0 }
 0x186   : > { %v638_v1 = vadd.f32 %v637_v63, %v636_v61  ;;  %v646_v2 = vsel %vm445_vm4, %v643_v60, 0.0  ;;  %v649_v7 = vsel %vm445_vm4, %v645_v0, 0.0 }
 0x187   : > { %v647_v4 = vsel %vm445_vm4, %v644_v62, 0.0 }
 0x188   : > { %v640_v5 = vadd.f32 %v639_v3, %v638_v1  ;;  %v648_v6 = vadd.f32 %v647_v4, %v646_v2 }
 0x18a   : > { %641 = vadd.xlane.f32.xlu1 %v640_v5  ;;  %v650_v8 = vadd.f32 %v649_v7, %v648_v6 }
 0x18c   : > { %651 = vadd.xlane.f32.xlu0 %v650_v8 }
 0x217   : > { %v642_v10 = vpop.xlane.xlu1 %641 }
 0x218   : > { %v653_v12 = vmul.f32 0.00390625, %v642_v10 }
 0x219   : > { %v652_v13 = vpop.xlane.xlu0 %651 }
 0x21a   : > { %v654_v14 = vmul.f32 0.00390625, %v652_v13  ;;  %v655_v15 = vmul.f32 %v653_v12, %v653_v12  ;;  %v658_v19 = vsub.f32 %v542_v52, %v653_v12  ;;  %v659_v20 = vsub.f32 %v544_v56, %v653_v12 }
 0x21b   : > { %v660_v21 = vsub.f32 %v613_v54, %v653_v12 }
 0x21c   : > { %v656_v9 = vsub.f32 %v654_v14, %v655_v15 }
 0x21e   : > { %v657_v16 = vmax.f32 %v656_v9, 0.0 }
 0x220   : > { %v661_v17 = vadd.f32 1e-05, %v657_v16 }
 0x222   : > { %980 = vrsqrt.f32 %v661_v17 }
 0x22c   : > { %v981_v23 = vpop.eup %980 }
 0x22d   : > { %v663_v25 = vmul.f32 %v981_v23, %v658_v19  ;;  %v664_v26 = vmul.f32 %v981_v23, %v659_v20  ;;  %v665_v27 = vmul.f32 %v981_v23, %v660_v21 }
 0x22f   : > { %v671_v28 = vadd.f32 %v666_v18, %v663_v25  ;;  %v672_v29 = vadd.f32 %v669_v22, %v664_v26  ;;  %v673_v30 = vadd.f32 %v667_v24, %v665_v27 }
 0x231   : > { %v676_v31 = vcombine.low %v671_v28, %v672_v29  ;;  %679 = vst [vmem:[%s314_s25 + $0x8] sm:$0xf] %v673_v30 }
 0x233   : > { %678 = vst [vmem:[%s314_s25] sm:$0xff] %v676_v31 }
 0x234 PF: > { %s15_s20 = sadd.s32 1, %s1004_s20   ;;  %s1173_s18 = smov %s1000_s19 }
 0x235   : > { %p12_p5 = scmp.ge.s32.totalorder %s15_s20, 4   ;;  %s1174_s19 = smov %s1176_s21 }
 0x237   :  { %14 = sbr.rel (!%p12_p5) target bundleno = 2 (0x2), region = 79 }

</bundles_post_ra>
